<compile_context>
chip_gen: v7x
topology: tpu7x:2x2x1
jax: 0.10.0
libtpu: 0.0.40
codegen_flags: <defaults>
</compile_context>

<pallas_src>
import jax
import jax.numpy as jnp
from jax import lax
from jax.experimental import pallas as pl
from jax.experimental.pallas import tpu as pltpu


def _channel_att_kernel(agg_ref, w1_ref, w2_ref, feat_ref, out_ref):
    # agg_ref : (B, T, D)         attention-branch input (constant block, fetched once)
    # w1_ref  : (40, D)           PyTorch nn.Linear layout (out, in), bias=False
    # w2_ref  : (40, 40)
    # feat_ref: (B, C, hw_tile)   lane-dense spatial tile of the feature
    # out_ref : (B, C, hw_tile)
    nt = (((1,), (1,)), ((), ()))  # contract dim 1 of lhs with dim 1 of rhs: x @ w.T

    # Attention branch in f32 (tiny; MXU is latency-only here and hidden
    # under the feature-tile DMA).
    pooled = jnp.mean(agg_ref[...].astype(jnp.float32), axis=1)              # (B, D)
    h = lax.dot_general(pooled, w1_ref[...].astype(jnp.float32),
                        dimension_numbers=nt,
                        preferred_element_type=jnp.float32)                  # (B, 40)
    h = jnp.maximum(h, 0.0)                                                  # ReLU
    att = lax.dot_general(h, w2_ref[...].astype(jnp.float32),
                          dimension_numbers=nt,
                          preferred_element_type=jnp.float32)                # (B, 40)
    att = jax.nn.sigmoid(att)                                                # (B, 40)

    # Dominant phase: lane-dense broadcast-multiply + store, in native dtype.
    out_ref[...] = feat_ref[...] * att.astype(out_ref.dtype)[:, :, None]


def channel_att(event_40C_feature, aggregrated_event, w1, w2,
                *, vmem_budget_bytes=8 * 1024 * 1024):
    """w1: (40, 512), w2: (40, 40) -- PyTorch nn.Linear weight layout (out, in)."""
    agg0 = aggregrated_event[0]                       # (B, T, D)
    B, C, H, W = event_40C_feature.shape
    Bt, T, D = agg0.shape
    assert Bt == B
    HW = H * W

    # Free contiguous reshape to a lane-dense last dim (no transpose, no copy).
    feat2d = event_40C_feature.reshape(B, C, HW)

    # Spatial tiling: largest 128-lane-aligned tile whose 4 live blocks
    # (in + out, each double-buffered) fit the VMEM budget.  If the whole
    # spatial extent fits, use one full-extent block (grid of 1), which also
    # satisfies the (8,128) rule for arbitrary H*W.
    itemsize = jnp.dtype(event_40C_feature.dtype).itemsize
    bytes_per_lane = B * C * itemsize
    max_tile = max(128, ((vmem_budget_bytes // (4 * bytes_per_lane)) // 128) * 128)
    tile = HW if HW <= max_tile else max_tile          # tile is full-extent or 128-aligned
    grid = (pl.cdiv(HW, tile),)                        # ragged last tile handled by Pallas

    out2d = pl.pallas_call(
        _channel_att_kernel,
        out_shape=jax.ShapeDtypeStruct((B, C, HW), event_40C_feature.dtype),
        grid=grid,
        in_specs=[
            pl.BlockSpec((B, T, D), lambda i: (0, 0, 0)),   # constant -> fetched once
            pl.BlockSpec(w1.shape, lambda i: (0, 0)),       # constant -> fetched once
            pl.BlockSpec(w2.shape, lambda i: (0, 0)),       # constant -> fetched once
            pl.BlockSpec((B, C, tile), lambda i: (0, 0, i)),
        ],
        out_specs=pl.BlockSpec((B, C, tile), lambda i: (0, 0, i)),
        compiler_params=pltpu.CompilerParams(
            dimension_semantics=("parallel",)),             # v7x: shard tiles over TCs
    )(agg0, w1, w2, feat2d)

    return out2d.reshape(B, C, H, W)


if __name__ == "__main__":
    # Module hard-codes: in_features = 512, out channels (event_c) = 40.
    B, C, H, W = 2, 40, 16, 16
    T, D = 8, 512

    key = jax.random.PRNGKey(0)
    k_feat, k_agg, k_w1, k_w2 = jax.random.split(key, 4)

    event_40C_feature = jax.random.normal(k_feat, (B, C, H, W), dtype=jnp.float32)
    agg_seq = jax.random.normal(k_agg, (B, T, D), dtype=jnp.float32)
    aggregrated_event = (agg_seq,)  # forward indexes [0]

    # nn.Linear(512, 40, bias=False) / nn.Linear(40, 40, bias=False) weights (out, in).
    w1 = 0.05 * jax.random.normal(k_w1, (40, D), dtype=jnp.float32)
    w2 = 0.05 * jax.random.normal(k_w2, (40, 40), dtype=jnp.float32)

    out = channel_att(event_40C_feature, aggregrated_event, w1, w2)
    out = jax.block_until_ready(out)

    # Pure-JAX reference for sanity.
    pooled = jnp.mean(agg_seq, axis=1)                                  # (B, 512)
    att = jax.nn.sigmoid(jnp.maximum(pooled @ w1.T, 0.0) @ w2.T)        # (B, 40)
    ref = event_40C_feature * att[:, :, None, None]
    assert jnp.allclose(out, ref, atol=1e-4, rtol=1e-4), "mismatch vs reference"

    print("KERNEL_OK")
</pallas_src>

<mosaic_0001>
module attributes {stable_mosaic.version = 11 : i64} {
  func.func @_channel_att_kernel(%arg0: i32, %arg1: memref<2x8x512xf32, #tpu.memory_space<vmem>>, %arg2: memref<40x512xf32, #tpu.memory_space<vmem>>, %arg3: memref<40x40xf32, #tpu.memory_space<vmem>>, %arg4: memref<2x40x256xf32, #tpu.memory_space<vmem>>, %arg5: memref<2x40x256xf32, #tpu.memory_space<vmem>>) attributes {dimension_semantics = [#tpu.dimension_semantics<parallel>], iteration_bounds = array<i64: 1>, scalar_prefetch = 0 : i64, scratch_operands = 0 : i64, tpu.core_type = #tpu.core_type<tc>, window_params = [{pipeline_mode = #tpu.pipeline_mode<synchronous>, transform_indices = @transform_0, window_bounds = array<i64: 2, 8, 512>}, {pipeline_mode = #tpu.pipeline_mode<synchronous>, transform_indices = @transform_1, window_bounds = array<i64: 40, 512>}, {pipeline_mode = #tpu.pipeline_mode<synchronous>, transform_indices = @transform_2, window_bounds = array<i64: 40, 40>}, {transform_indices = @transform_3, window_bounds = array<i64: 2, 40, 256>}, {transform_indices = @transform_4, window_bounds = array<i64: 2, 40, 256>}]} {
    %c0 = arith.constant 0 : index
    %c0_0 = arith.constant 0 : index
    %c0_1 = arith.constant 0 : index
    %0 = vector.load %arg1[%c0, %c0_0, %c0_1] : memref<2x8x512xf32, #tpu.memory_space<vmem>>, vector<2x8x512xf32>
    %cst = arith.constant dense<0.000000e+00> : vector<2x512xf32>
    %1 = vector.multi_reduction <add>, %0, %cst [1] : vector<2x8x512xf32> to vector<2x512xf32>
    %cst_2 = arith.constant 8.000000e+00 : f32
    %2 = vector.broadcast %cst_2 : f32 to vector<2x512xf32>
    %3 = arith.divf %1, %2 : vector<2x512xf32>
    %c0_3 = arith.constant 0 : index
    %c0_4 = arith.constant 0 : index
    %4 = vector.load %arg2[%c0_3, %c0_4] : memref<40x512xf32, #tpu.memory_space<vmem>>, vector<40x512xf32>
    %cst_5 = arith.constant dense<0.000000e+00> : vector<2x40xf32>
    %5 = tpu.matmul %3, %4, %cst_5 {dimension_numbers = #tpu.dot_dimension_numbers<[1], [1], [0], [0], [0, 0, 1, 0], [], []>} : vector<2x512xf32>, vector<40x512xf32>, vector<2x40xf32> -> vector<2x40xf32>
    %cst_6 = arith.constant 0.000000e+00 : f32
    %6 = vector.broadcast %cst_6 : f32 to vector<2x40xf32>
    %7 = arith.maximumf %5, %6 : vector<2x40xf32>
    %c0_7 = arith.constant 0 : index
    %c0_8 = arith.constant 0 : index
    %8 = vector.load %arg3[%c0_7, %c0_8] : memref<40x40xf32, #tpu.memory_space<vmem>>, vector<40x40xf32>
    %cst_9 = arith.constant dense<0.000000e+00> : vector<2x40xf32>
    %9 = tpu.matmul %7, %8, %cst_9 {dimension_numbers = #tpu.dot_dimension_numbers<[1], [1], [0], [0], [0, 0, 1, 0], [], []>} : vector<2x40xf32>, vector<40x40xf32>, vector<2x40xf32> -> vector<2x40xf32>
    %10 = arith.negf %9 : vector<2x40xf32>
    %11 = math.exp %10 : vector<2x40xf32>
    %cst_10 = arith.constant 1.000000e+00 : f32
    %12 = vector.broadcast %cst_10 : f32 to vector<2x40xf32>
    %13 = arith.addf %12, %11 : vector<2x40xf32>
    %14 = arith.divf %12, %13 : vector<2x40xf32>
    %c0_11 = arith.constant 0 : index
    %c0_12 = arith.constant 0 : index
    %c0_13 = arith.constant 0 : index
    %15 = vector.load %arg4[%c0_11, %c0_12, %c0_13] : memref<2x40x256xf32, #tpu.memory_space<vmem>>, vector<2x40x256xf32>
    %16 = vector.shape_cast %14 : vector<2x40xf32> to vector<2x40x1xf32>
    %17 = vector.broadcast %16 : vector<2x40x1xf32> to vector<2x40x256xf32>
    %18 = arith.mulf %15, %17 : vector<2x40x256xf32>
    %c0_14 = arith.constant 0 : index
    %c0_15 = arith.constant 0 : index
    %c0_16 = arith.constant 0 : index
    %19 = vector.load %arg5[%c0_14, %c0_15, %c0_16] : memref<2x40x256xf32, #tpu.memory_space<vmem>>, vector<2x40x256xf32>
    tpu.vector_store %arg5[%c0_14, %c0_15, %c0_16], %18 {strides = array<i32>} : memref<2x40x256xf32, #tpu.memory_space<vmem>>, vector<2x40x256xf32>,
    return
  }
  func.func @transform_0(%arg0: i32) -> (i32, i32, i32) {
    %c0_i32 = arith.constant 0 : i32
    %c0_i32_0 = arith.constant 0 : i32
    %c0_i32_1 = arith.constant 0 : i32
    %c0_i32_2 = arith.constant 0 : i32
    return %c0_i32, %c0_i32_0, %c0_i32_1 : i32, i32, i32
  }
  func.func @transform_1(%arg0: i32) -> (i32, i32) {
    %c0_i32 = arith.constant 0 : i32
    %c0_i32_0 = arith.constant 0 : i32
    %c0_i32_1 = arith.constant 0 : i32
    return %c0_i32, %c0_i32_0 : i32, i32
  }
  func.func @transform_2(%arg0: i32) -> (i32, i32) {
    %c0_i32 = arith.constant 0 : i32
    %c0_i32_0 = arith.constant 0 : i32
    %c0_i32_1 = arith.constant 0 : i32
    return %c0_i32, %c0_i32_0 : i32, i32
  }
  func.func @transform_3(%arg0: i32) -> (i32, i32, i32) {
    %c0_i32 = arith.constant 0 : i32
    %c0_i32_0 = arith.constant 0 : i32
    %c0_i32_1 = arith.constant 0 : i32
    return %c0_i32, %c0_i32_0, %arg0 : i32, i32, i32
  }
  func.func @transform_4(%arg0: i32) -> (i32, i32, i32) {
    %c0_i32 = arith.constant 0 : i32
    %c0_i32_0 = arith.constant 0 : i32
    %c0_i32_1 = arith.constant 0 : i32
    return %c0_i32, %c0_i32_0, %arg0 : i32, i32, i32
  }
}

</mosaic_0001>

<bundles_post_ra>
// kernel: tpu_custom_call.1
= control target key start
LH: loop header
LB: loop body
LE: loop exit
PB: predicated region body
PF: predicated region fallthrough
CT: control target
= control target key end

     0   :  { %9 = vsyncpa [#allocation3], 0  ;;  %s859_s0 = inlined_call_operand.hbm [shape: f32[2,8,512], index: 0, kind: input, shape index: {}]   ;;  %s860_s1 = inlined_call_operand.hbm [shape: f32[40,512], index: 1, kind: input, shape index: {}]   ;;  %s861_s2 = inlined_call_operand.hbm [shape: f32[40,40], index: 2, kind: input, shape index: {}]   ;;  %s862_s3 = inlined_call_operand.hbm [shape: f32[2,40,256], index: 3, kind: input, shape index: {}]   ;;  %s863_s4 = inlined_call_operand.hbm [shape: f32[2,40,256], index: 4, kind: output, shape index: {}]  }
   0x1   :  { %10 = vsyncpa [#allocation6], 0 }
   0x2   :  { %11 = vsyncpa [#allocation9], 0 }
   0x3   :  { %12 = vsyncpa [#allocation4], 0  ;;  %s729_s15 = smov [#allocation5]   ;;  %s730_s17 = smov [#allocation2]  }
   0x4   :  { %s30_s16 = sshll.u32 %s729_s15, 4  ;;  %s18_s18 = sshll.u32 %s730_s17, 4  ;;  %s31_s16 = int_to_ptr.vmem [resolvable:$true] %s30_s16  ;;  %s768_s18 = int_to_ptr.vmem [resolvable:$true] %s18_s18 }
   0x5   :  { %s611_s21 = scalar_lea.hbm %s860_s1, 2560 }
   0x6   :  { %p612_p0 = scmp.ne.s32.totalorder %s860_s1, %s611_s21  ;;  %p615_p1 = scmp.lt.u32.totalorder %s611_s21, %s860_s1 }
   0x8   :  { %p617_p2 = pnand %p615_p1, %p612_p0 }
   0xa   :  { %620 = shalt.err (!%p617_p2)
}
   0xb   :  { %s621_s26 = scalar_lea.vmem %s31_s16, 2560  ;;  %p626_p4 = scmp.lt.s32.totalorder %s31_s16, %s31_s16 }
   0xc   :  { %p622_p3 = scmp.ne.s32.totalorder %s31_s16, %s621_s26  ;;  %p627_p5 = scmp.lt.s32.totalorder %s621_s26, %s621_s26 }
   0xe   :  { %p628_p6 = por %p627_p5, %p626_p4 }
  0x10   :  { %p629_p7 = pnand %p628_p6, %p622_p3 }
  0x12   :  { %632 = shalt.err (!%p629_p7)
}
  0x13   :  { %s731_s27 = smov 512   ;;  %s732_s28 = smov 32  }
  0x14   :  { %36 = dma.hbm_to_vmem [thread:$0]  %s860_s1, 2560, %s31_s16, [#allocation6], %s731_s27, %s731_s27, %s732_s28  }
  0x15   :  { %s633_s7 = scalar_lea.hbm %s859_s0, 1024 }
  0x16   :  { %p634_p8 = scmp.ne.s32.totalorder %s859_s0, %s633_s7  ;;  %p637_p9 = scmp.lt.u32.totalorder %s633_s7, %s859_s0 }
  0x18   :  { %p639_p10 = pnand %p637_p9, %p634_p8 }
  0x1a   :  { %642 = shalt.err (!%p639_p10)
}
  0x1b   :  { %s643_s12 = scalar_lea.vmem %s768_s18, 1024  ;;  %p648_p12 = scmp.lt.s32.totalorder %s768_s18, %s768_s18 }
  0x1c   :  { %p644_p11 = scmp.ne.s32.totalorder %s768_s18, %s643_s12  ;;  %p649_p13 = scmp.lt.s32.totalorder %s643_s12, %s643_s12 }
  0x1e   :  { %p650_p0 = por %p649_p13, %p648_p12 }
  0x20   :  { %p651_p1 = pnand %p650_p0, %p644_p11 }
  0x22   :  { %654 = shalt.err (!%p651_p1)
}
  0x23   :  { %24 = dma.hbm_to_vmem [thread:$0]  %s859_s0, 1024, %s768_s18, [#allocation3], %s731_s27, %s731_s27, %s732_s28  }
  0x24   :  { %s733_s14 = smov [#allocation7]   ;;  %s655_s19 = scalar_lea.hbm %s861_s2, 640 }
  0x25   :  { %s42_s15 = sshll.u32 %s733_s14, 4  ;;  %p656_p2 = scmp.ne.s32.totalorder %s861_s2, %s655_s19  ;;  %s43_s15 = int_to_ptr.vmem [resolvable:$true] %s42_s15 }
  0x26   :  { %p659_p3 = scmp.lt.u32.totalorder %s655_s19, %s861_s2 }
  0x28   :  { %p661_p4 = pnand %p659_p3, %p656_p2 }
  0x2a   :  { %664 = shalt.err (!%p661_p4)
}
  0x2b   :  { %s665_s24 = scalar_lea.vmem %s43_s15, 640  ;;  %p670_p6 = scmp.lt.s32.totalorder %s43_s15, %s43_s15 }
  0x2c   :  { %p666_p5 = scmp.ne.s32.totalorder %s43_s15, %s665_s24  ;;  %p671_p7 = scmp.lt.s32.totalorder %s665_s24, %s665_s24 }
  0x2e   :  { %p672_p8 = por %p671_p7, %p670_p6 }
  0x30   :  { %p673_p9 = pnand %p672_p8, %p666_p5 }
  0x32   :  { %676 = shalt.err (!%p673_p9)
}
  0x33   :  { %s734_s0 = smov 128   ;;  %s735_s18 = smov 8  }
  0x34   :  { %48 = dma.hbm_to_vmem [thread:$0]  %s861_s2, 640, %s43_s15, [#allocation6], %s734_s0, %s734_s0, %s735_s18  }
  0x35   :  { %s736_s27 = smov [#allocation8]   ;;  %s677_s5 = scalar_lea.hbm %s862_s3, 2560 }
  0x36   :  { %s54_s28 = sshll.u32 %s736_s27, 4  ;;  %p678_p10 = scmp.ne.s32.totalorder %s862_s3, %s677_s5  ;;  %s55_s28 = int_to_ptr.vmem [resolvable:$true] %s54_s28 }
  0x37   :  { %p681_p11 = scmp.lt.u32.totalorder %s677_s5, %s862_s3 }
  0x39   :  { %p683_p12 = pnand %p681_p11, %p678_p10 }
  0x3b   :  { %686 = shalt.err (!%p683_p12)
}
  0x3c   :  { %s687_s10 = scalar_lea.vmem %s55_s28, 2560  ;;  %p692_p0 = scmp.lt.s32.totalorder %s55_s28, %s55_s28 }
  0x3d   :  { %p688_p13 = scmp.ne.s32.totalorder %s55_s28, %s687_s10  ;;  %p693_p1 = scmp.lt.s32.totalorder %s687_s10, %s687_s10 }
  0x3f   :  { %p694_p2 = por %p693_p1, %p692_p0 }
  0x41   :  { %p695_p3 = pnand %p694_p2, %p688_p13 }
  0x43   :  { %698 = shalt.err (!%p695_p3)
}
  0x44   :  { %s737_s2 = smov 256   ;;  %s738_s11 = smov 16  }
  0x45   :  { %60 = dma.hbm_to_vmem [thread:$0]  %s862_s3, 2560, %s55_s28, [#allocation9], %s737_s2, %s737_s2, %s738_s11  }
  0x46   :  { %721 = dma.done.wait [#allocation3], 1024  }
  0x47   :  { %722 = vsyncadd [#allocation3], 4294966272 }
  0x48   :  { %723 = dma.done.wait [#allocation6], 3200  }
  0x49   :  { %724 = vsyncadd [#allocation6], 4294964096 }
  0x4a   :  { %725 = dma.done.wait [#allocation9], 2560  }
  0x4b   :  { %726 = vsyncadd [#allocation9], 4294964736  ;;  %v739_v0 = vmov 0.0|0.0   ;;  %v139_v1 = vld [vmem:[#allocation5 + $0x8] sm:$0xff]  ;;  %v138_v3 = vld [vmem:[#allocation5] sm:$0xff]  ;;  %vm321_vm0 = vcmask 326656  }
  0x4c   :  { %583 = vmatprep.subr.bf16.mxu1 %v739_v0  ;;  %v143_v2 = vld [vmem:[#allocation5 + $0x28] sm:$0xff]  ;;  %v142_v5 = vld [vmem:[#allocation5 + $0x20] sm:$0xff]  ;;  %v76_v27 = vld [vmem:[#allocation2 + $0x18] sm:$0xff]  ;;  %vm166_vm1 = vcmask 1041409   ;;  %vm741_vm3 = vmmov 0   ;;  %s742_s3 = smov [#allocation10]  }
  0x4d   :  { %v567_v4 = vpack.c.bf16 %v143_v2, %v139_v1  ;;  %v147_v6 = vld [vmem:[#allocation5 + $0x48] sm:$0xff]  ;;  %v569_v8 = vpack.c.bf16 %v142_v5, %v138_v3  ;;  %v73_v14 = vld [vmem:[#allocation2] sm:$0xff]  ;;  %v80_v28 = vld [vmem:[#allocation2 + $0x38] sm:$0xff]  ;;  %v99_v31 = vrot.slane %v76_v27, 4  ;;  %s527_s13 = sshll.u32 %s742_s3, 4  ;;  %s528_s13 = int_to_ptr.vmem [resolvable:$true] %s527_s13 }
  0x4e   :  { %v151_v7 = vld [vmem:[#allocation5 + $0x68] sm:$0xff]  ;;  %v146_v15 = vld [vmem:[#allocation5 + $0x40] sm:$0xff]  ;;  %v81_v18 = vrot.slane %v73_v14, 4  ;;  %v75_v29 = vld [vmem:[#allocation2 + $0x10] sm:$0xff]  ;;  %v123_v32 = vrot.slane %v80_v28, 4  ;;  %s699_s14 = scalar_lea.vmem %s528_s13, 2560  ;;  %p704_p5 = scmp.lt.s32.totalorder %s528_s13, %s528_s13 }
  0x4f   :  { %v571_v9 = vpack.c.bf16 %v151_v7, %v147_v6  ;;  %568 = vmatprep.subr.bf16.mxu0 %v567_v4  ;;  %v74_v10 = vld [vmem:[#allocation2 + $0x8] sm:$0xff]  ;;  %v150_v16 = vld [vmem:[#allocation5 + $0x60] sm:$0xff]  ;;  %v79_v33 = vld [vmem:[#allocation2 + $0x30] sm:$0xff]  ;;  %v100_v39 = vadd.f32 %v99_v31, %v76_v27  ;;  %v93_v41 = vrot.slane %v75_v29, 4  ;;  %p700_p4 = scmp.ne.s32.totalorder %s528_s13, %s699_s14  ;;  %p705_p6 = scmp.lt.s32.totalorder %s699_s14, %s699_s14 }
  0x50   :  { %v78_v11 = vld [vmem:[#allocation2 + $0x28] sm:$0xff]  ;;  %570 = vmatpush1.bf16.xpose.msra.mxu0 %v569_v8  ;;  %v87_v12 = vrot.slane %v74_v10, 4  ;;  %v77_v17 = vld [vmem:[#allocation2 + $0x20] sm:$0xff]  ;;  %v82_v22 = vadd.f32 %v81_v18, %v73_v14  ;;  %v573_v23 = vpack.c.bf16 %v150_v16, %v146_v15  ;;  %v124_v40 = vadd.f32 %v123_v32, %v80_v28  ;;  %v141_v51 = vld [vmem:[#allocation5 + $0x18] sm:$0xff] }
  0x51   :  { %v111_v13 = vrot.slane %v78_v11, 4  ;;  %572 = vmatprep.subr.bf16.mxu0 %v571_v9  ;;  %v105_v21 = vrot.slane %v77_v17, 4  ;;  %v155_v34 = vld [vmem:[#allocation5 + $0x88] sm:$0xff]  ;;  %v117_v45 = vrot.slane %v79_v33, 4  ;;  %v101_v47 = vrot.slane %v100_v39, 2  ;;  %v145_v52 = vld [vmem:[#allocation5 + $0x38] sm:$0xff]  ;;  %vm829_vm2 = vmpackc.low %vm321_vm0, %vm321_vm0  ;;  %p706_p7 = por %p705_p6, %p704_p5 }
  0x52   :  { %v88_v19 = vadd.f32 %v87_v12, %v74_v10  ;;  %v83_v30 = vrot.slane %v82_v22, 2  ;;  %v125_v48 = vrot.slane %v124_v40, 2  ;;  %v94_v57 = vadd.f32 %v93_v41, %v75_v29  ;;  %v316_v58 = vld [vmem:[#allocation7] sm:$0xff]  ;;  %v317_v59 = vld [vmem:[#allocation7 + $0x8] sm:$0xff]  ;;  %v140_v5 = vld [vmem:[#allocation5 + $0x10] sm:$0xff] }
  0x53   :  { %v112_v20 = vadd.f32 %v111_v13, %v78_v11  ;;  %v106_v26 = vadd.f32 %v105_v21, %v77_v17  ;;  %v102_v55 = vadd.f32 %v101_v47, %v100_v39  ;;  %v118_v63 = vadd.f32 %v117_v45, %v79_v33  ;;  %v154_v2 = vld [vmem:[#allocation5 + $0x80] sm:$0xff]  ;;  %v144_v6 = vld [vmem:[#allocation5 + $0x30] sm:$0xff]  ;;  %v149_v11 = vld [vmem:[#allocation5 + $0x58] sm:$0xff]  ;;  %p707_p8 = pnand %p706_p7, %p700_p4 }
  0x54   :  { %v89_v24 = vrot.slane %v88_v19, 2  ;;  %v84_v38 = vadd.f32 %v83_v30, %v82_v22  ;;  %v126_v56 = vadd.f32 %v125_v48, %v124_v40  ;;  %v575_v3 = vpack.c.bf16 %v145_v52, %v141_v51  ;;  %v153_v12 = vld [vmem:[#allocation5 + $0x78] sm:$0xff]  ;;  %v148_v29 = vld [vmem:[#allocation5 + $0x50] sm:$0xff]  ;;  %v320_v41 = vld [vmem:[#allocation7 + $0x20] sm:$0xff] }
  0x55   :  { %v113_v25 = vrot.slane %v112_v20, 2  ;;  %v107_v37 = vrot.slane %v106_v26, 2  ;;  %v103_v7 = vrot.slane %v102_v55, 1  ;;  %v584_v13 = vpack.c.bf16 %v317_v59, %v316_v58  ;;  %v152_v30 = vld [vmem:[#allocation5 + $0x70] sm:$0xff]  ;;  %v416_v59 = vld [vmem:[#allocation8] sm:$0xff] }
  0x56   :  { %v90_v35 = vadd.f32 %v89_v24, %v88_v19  ;;  %v85_v46 = vrot.slane %v84_v38, 1  ;;  %v127_v8 = vrot.slane %v126_v56, 1  ;;  %v577_v17 = vpack.c.bf16 %v144_v6, %v140_v5  ;;  %v319_v24 = vld [vmem:[#allocation7 + $0x18] sm:$0xff]  ;;  %v156_v39 = vld [vmem:[#allocation5 + $0x90] sm:$0xff]  ;;  %v423_v5 = vld [vmem:[#allocation8 + $0x38] sm:$0xff] }
  0x57   :  { %v114_v36 = vadd.f32 %v113_v25, %v112_v20  ;;  %v108_v44 = vadd.f32 %v107_v37, %v106_v26  ;;  %v104_v14 = vadd.f32 %v103_v7, %v102_v55  ;;  %v95_v18 = vrot.slane %v94_v57, 2  ;;  %586 = vmatpush3.bf16.xpose.msk.msra.mxu1 %vm829_vm2, %v584_v13  ;;  %v421_v58 = vld [vmem:[#allocation8 + $0x28] sm:$0xff]  ;;  %v418_v6 = vld [vmem:[#allocation8 + $0x10] sm:$0xff]  ;;  %v419_v7 = vld [vmem:[#allocation8 + $0x18] sm:$0xff] }
  0x58   :  { %574 = vmatpush1.bf16.xpose.msra.mxu0 %v573_v23  ;;  %v91_v42 = vrot.slane %v90_v35, 1  ;;  %v86_v54 = vadd.f32 %v85_v46, %v84_v38  ;;  %v128_v15 = vadd.f32 %v127_v8, %v126_v56  ;;  %v119_v19 = vrot.slane %v118_v63, 2  ;;  %587 = vmatprep.subr.bf16.mxu1 %v739_v0  ;;  %v318_v23 = vld [vmem:[#allocation7 + $0x10] sm:$0xff] }
  0x59   :  { %v115_v43 = vrot.slane %v114_v36, 1  ;;  %183 = vmatprep.subr.mxu0 %v155_v34  ;;  %v109_v53 = vrot.slane %v108_v44, 1  ;;  %v579_v20 = vpack.c.bf16 %v153_v12, %v149_v11  ;;  %v133_v21 = vmul.f32 0.125, %v104_v14  ;;  %v157_v34 = vld [vmem:[#allocation5 + $0x98] sm:$0xff] }
  0x5a   :  { %v92_v49 = vadd.f32 %v91_v42, %v90_v35  ;;  %v130_v4 = vmul.f32 0.125, %v86_v54  ;;  %v137_v22 = vmul.f32 0.125, %v128_v15  ;;  %v96_v26 = vadd.f32 %v95_v18, %v94_v57  ;;  %v420_v57 = vld [vmem:[#allocation8 + $0x20] sm:$0xff]  ;;  %v426_v14 = vld [vmem:[#allocation8 + $0x50] sm:$0xff]  ;;  %v427_v15 = vld [vmem:[#allocation8 + $0x58] sm:$0xff] }
  0x5b   :  { %v116_v50 = vadd.f32 %v115_v43, %v114_v36  ;;  %v110_v62 = vadd.f32 %v109_v53, %v108_v44  ;;  %v120_v27 = vadd.f32 %v119_v19, %v118_v63  ;;  %v588_v28 = vpack.c.bf16 %v319_v24, %v318_v23  ;;  %v430_v24 = vld [vmem:[#allocation8 + $0x70] sm:$0xff] }
  0x5c   :  { %v131_v60 = vmul.f32 0.125, %v92_v49  ;;  %v170_v25 = vsel %vm166_vm1, %v137_v22, %v133_v21  ;;  %v581_v31 = vpack.c.bf16 %v152_v30, %v148_v29  ;;  %v97_v32 = vrot.slane %v96_v26, 1 }
  0x5d   :  { %v135_v61 = vmul.f32 0.125, %v116_v50  ;;  %v134_v10 = vmul.f32 0.125, %v110_v62  ;;  %v121_v33 = vrot.slane %v120_v27, 1  ;;  %v740_v0 = vmov 0.0  }
  0x5e   :  { %v98_v35 = vadd.f32 %v97_v32, %v96_v26  ;;  %564 = vmatprep.mubr.msk.f32.mxu1 %vm741_vm3, %v740_v0  ;;  %v436_v50 = vlaneseq  ;;  %v428_v26 = vld [vmem:[#allocation8 + $0x60] sm:$0xff] }
  0x5f   :  { %v168_v9 = vsel %vm166_vm1, %v135_v61, %v131_v60  ;;  %v167_v16 = vsel %vm166_vm1, %v134_v10, %v130_v4  ;;  %590 = vmatpush3.bf16.xpose.msk.msra.mxu1 %vm829_vm2, %v588_v28  ;;  %v122_v36 = vadd.f32 %v121_v33, %v120_v27  ;;  %v417_v60 = vld [vmem:[#allocation8 + $0x8] sm:$0xff]  ;;  %v422_v4 = vld [vmem:[#allocation8 + $0x30] sm:$0xff] }
  0x60   :  { %239 = vmatprep.mubr.f32.mxu0 %v168_v9  ;;  %184 = vmatpush1.xpose.msra.mxu0 %v154_v2  ;;  %v132_v37 = vmul.f32 0.125, %v98_v35  ;;  %v437_v51 = vshrl.u32 %v436_v50, 7  ;;  %v429_v27 = vld [vmem:[#allocation8 + $0x68] sm:$0xff]  ;;  %v432_v35 = vld [vmem:[#allocation8 + $0x80] sm:$0xff] }
  0x61   :  { %576 = vmatprep.subr.bf16.mxu0 %v575_v3  ;;  %562 = vmatprep.subr.mxu1 %v740_v0  ;;  %v136_v38 = vmul.f32 0.125, %v122_v36  ;;  %v434_v0 = vld [vmem:[#allocation8 + $0x90] sm:$0xff]  ;;  %v433_v36 = vld [vmem:[#allocation8 + $0x88] sm:$0xff] }
  0x62   :  { %v438_v52 = vsub.s32 0, %v437_v51  ;;  %v461_v55 = vsub.s32 1, %v437_v51 }
  0x63   :  { %240 = vmatmul.mubr.f32.vlgmr.msra.gmra.mrb[0].mxu0 %v167_v16  ;;  %v169_v40 = vsel %vm166_vm1, %v136_v38, %v132_v37  ;;  %v424_v16 = vld [vmem:[#allocation8 + $0x40] sm:$0xff] }
  0x64   :  { %578 = vmatpush1.bf16.xpose.msra.mxu0 %v577_v17  ;;  %309 = vmatprep.mubr.f32.mxu0 %v170_v25  ;;  %v425_v17 = vld [vmem:[#allocation8 + $0x48] sm:$0xff]  ;;  %v431_v25 = vld [vmem:[#allocation8 + $0x78] sm:$0xff] }
  0x65   :  { %580 = vmatprep.subr.bf16.mxu0 %v579_v20 }
  0x67   :  { %563 = vmatpush3.xpose.msk.msra.mxu1 %vm321_vm0, %v320_v41 }
  0x6c   :  { %582 = vmatpush1.bf16.xpose.msra.mxu0 %v581_v31 }
  0x6d   :  { %253 = vmatprep.subr.mxu0 %v157_v34  ;;  %v435_v34 = vld [vmem:[#allocation8 + $0x98] sm:$0xff] }
  0x74   :  { %254 = vmatpush1.xpose.msra.mxu0 %v156_v39 }
  0x77   :  { %310 = vmatmul.mubr.f32.vlgmr.msra.gmra.mrb[0].mxu0 %v169_v40 }
 0x14a   :  { %v311_v42 = vpop.f32.mrb[0].mxu0 }
 0x14b   :  { %v315_v43 = vmax.f32 %v311_v42, 0.0  ;;  %v313_v44 = vpop.f32.mrb[1].mxu0 }
 0x14d   :  { %565 = vmatmul.mubr.msk.f32.vlgmr.msra.gmra.mrb[0].mxu1 %vm321_vm0, %v315_v43 }
 0x220   :  { %v406_v45 = vpop.f32.mrb[0].mxu1 }
 0x221   :  { %v547_v46 = vmul.f32 -1.442695, %v406_v45  ;;  %v566_v47 = vpop.f32.mrb[1].mxu1 }
 0x223   :  { %607 = vpow2.f32 %v547_v46 }
 0x22d   :  { %v608_v48 = vpop.eup %607 }
 0x22e   :  { %v413_v49 = vadd.f32 1.0, %v608_v48 }
 0x230   :  { %609 = vrcp.f32 %v413_v49 }
 0x23a   :  { %v610_v53 = vpop.eup %609 }
 0x23b   :  { %v439_v54 = vrot.slane %v610_v53, %v438_v52  ;;  %v462_v56 = vrot.slane %v610_v53, %v461_v55 }
 0x23d   :  { %449 = vbcast.lane.b32.xlu1 %v439_v54, 272  ;;  %441 = vbcast.lane.b32.xlu0 %v439_v54, 256 }
 0x241   :  { %453 = vbcast.lane.b32.xlu1 %v439_v54, 280  ;;  %445 = vbcast.lane.b32.xlu0 %v439_v54, 264 }
 0x245   :  { %464 = vbcast.lane.b32.xlu1 %v462_v56, 256  ;;  %457 = vbcast.lane.b32.xlu0 %v439_v54, 288 }
 0x249   :  { %472 = vbcast.lane.b32.xlu1 %v462_v56, 272  ;;  %468 = vbcast.lane.b32.xlu0 %v462_v56, 264 }
 0x24d   :  { %480 = vbcast.lane.b32.xlu1 %v462_v56, 288  ;;  %476 = vbcast.lane.b32.xlu0 %v462_v56, 280 }
 0x2af   :  { %v450_v61 = vpop.permute.xlu1 %449  ;;  %v442_v62 = vpop.permute.xlu0 %441 }
 0x2b0   :  { %v486_v63 = vmul.f32 %v450_v61, %v420_v57  ;;  %v487_v1 = vmul.f32 %v450_v61, %v421_v58  ;;  %v482_v2 = vmul.f32 %v442_v62, %v416_v59  ;;  %v483_v3 = vmul.f32 %v442_v62, %v417_v60 }
 0x2b2   :  { %506 = vst [vmem:[#allocation10 + $0x20] sm:$0xff] %v486_v63  ;;  %507 = vst [vmem:[#allocation10 + $0x28] sm:$0xff] %v487_v1 }
 0x2b3   :  { %502 = vst [vmem:[#allocation10] sm:$0xff] %v482_v2  ;;  %503 = vst [vmem:[#allocation10 + $0x8] sm:$0xff] %v483_v3  ;;  %v454_v8 = vpop.permute.xlu1 %453  ;;  %v446_v9 = vpop.permute.xlu0 %445 }
 0x2b4   :  { %v488_v10 = vmul.f32 %v454_v8, %v422_v4  ;;  %v489_v11 = vmul.f32 %v454_v8, %v423_v5  ;;  %v484_v12 = vmul.f32 %v446_v9, %v418_v6  ;;  %v485_v13 = vmul.f32 %v446_v9, %v419_v7 }
 0x2b6   :  { %508 = vst [vmem:[#allocation10 + $0x30] sm:$0xff] %v488_v10  ;;  %509 = vst [vmem:[#allocation10 + $0x38] sm:$0xff] %v489_v11 }
 0x2b7   :  { %504 = vst [vmem:[#allocation10 + $0x10] sm:$0xff] %v484_v12  ;;  %505 = vst [vmem:[#allocation10 + $0x18] sm:$0xff] %v485_v13  ;;  %v465_v18 = vpop.permute.xlu1 %464  ;;  %v458_v19 = vpop.permute.xlu0 %457 }
 0x2b8   :  { %v492_v20 = vmul.f32 %v465_v18, %v426_v14  ;;  %v493_v21 = vmul.f32 %v465_v18, %v427_v15  ;;  %v490_v22 = vmul.f32 %v458_v19, %v424_v16  ;;  %v491_v23 = vmul.f32 %v458_v19, %v425_v17 }
 0x2ba   :  { %512 = vst [vmem:[#allocation10 + $0x50] sm:$0xff] %v492_v20  ;;  %513 = vst [vmem:[#allocation10 + $0x58] sm:$0xff] %v493_v21 }
 0x2bb   :  { %510 = vst [vmem:[#allocation10 + $0x40] sm:$0xff] %v490_v22  ;;  %511 = vst [vmem:[#allocation10 + $0x48] sm:$0xff] %v491_v23  ;;  %v473_v28 = vpop.permute.xlu1 %472  ;;  %v469_v29 = vpop.permute.xlu0 %468 }
 0x2bc   :  { %v496_v30 = vmul.f32 %v473_v28, %v430_v24  ;;  %v497_v31 = vmul.f32 %v473_v28, %v431_v25  ;;  %v494_v32 = vmul.f32 %v469_v29, %v428_v26  ;;  %v495_v33 = vmul.f32 %v469_v29, %v429_v27 }
 0x2be   :  { %516 = vst [vmem:[#allocation10 + $0x70] sm:$0xff] %v496_v30  ;;  %517 = vst [vmem:[#allocation10 + $0x78] sm:$0xff] %v497_v31 }
 0x2bf   :  { %514 = vst [vmem:[#allocation10 + $0x60] sm:$0xff] %v494_v32  ;;  %515 = vst [vmem:[#allocation10 + $0x68] sm:$0xff] %v495_v33  ;;  %v481_v37 = vpop.permute.xlu1 %480  ;;  %v477_v38 = vpop.permute.xlu0 %476 }
 0x2c0   :  { %v500_v39 = vmul.f32 %v481_v37, %v434_v0  ;;  %v501_v40 = vmul.f32 %v481_v37, %v435_v34  ;;  %v498_v41 = vmul.f32 %v477_v38, %v432_v35  ;;  %v499_v42 = vmul.f32 %v477_v38, %v433_v36 }
 0x2c2   :  { %520 = vst [vmem:[#allocation10 + $0x90] sm:$0xff] %v500_v39  ;;  %521 = vst [vmem:[#allocation10 + $0x98] sm:$0xff] %v501_v40 }
 0x2c3   :  { %518 = vst [vmem:[#allocation10 + $0x80] sm:$0xff] %v498_v41  ;;  %519 = vst [vmem:[#allocation10 + $0x88] sm:$0xff] %v499_v42 }
 0x2c4   :  { %710 = shalt.err (!%p707_p8)
}
 0x2c5   :  { %s711_s17 = scalar_lea.hbm %s863_s4, 2560 }
 0x2c6   :  { %p712_p9 = scmp.ne.s32.totalorder %s863_s4, %s711_s17  ;;  %p715_p10 = scmp.lt.u32.totalorder %s711_s17, %s863_s4 }
 0x2c8   :  { %p717_p11 = pnand %p715_p10, %p712_p9 }
 0x2ca   :  { %720 = shalt.err (!%p717_p11)
}
 0x2cb   :  { %533 = dma.vmem_to_hbm [thread:$0]  %s528_s13, 2560, %s863_s4, [#allocation4], %s737_s2, %s737_s2, %s738_s11  }
 0x2cc   :  { %727 = dma.done.wait [#allocation4], 2560  }
 0x2cd   :  { %728 = vsyncadd [#allocation4], 4294964736 }
 0x2ce   :  { %537 = vsyncpa [#allocation3], 1 }
 0x2cf   :  { %538 = vsyncpa [#allocation6], 1 }
 0x2d0   :  { %539 = vsyncpa [#allocation9], 1 }
 0x2d1   :  { %540 = vsyncpa [#allocation4], 1 }

</bundles_post_ra>
